<compile_context>
chip_gen: v7x
topology: tpu7x:2x2x1
jax: 0.10.0
libtpu: 0.0.40
codegen_flags: <defaults>
</compile_context>

<pallas_src>
import jax
import jax.numpy as jnp
from jax.experimental import pallas as pl
from jax.experimental.pallas import tpu as pltpu


def _round_up(a: int, b: int) -> int:
    return (a + b - 1) // b * b


def _squash_kernel(w_ref, b_ref, wsq_ref, bsq_ref):
    # One-shot parameter squashing: tanh(weight) -> bf16, tanh(bias) -> f32.
    wsq_ref[...] = jnp.tanh(w_ref[...].astype(jnp.float32)).astype(wsq_ref.dtype)
    bsq_ref[...] = jnp.tanh(b_ref[...].astype(jnp.float32))


def ternary_conv2d(x, weight, bias=None, *, lane_tile=1024):
    """x: (N, Cin, H, W); weight: (Cout, Cin, KH, KW); bias: (Cout,) or None.

    Equivalent to F.conv2d(x, tanh(weight), tanh(bias)) with default
    stride=1, padding=0, dilation=1, groups=1.  bf16 MXU operands, f32
    accumulation (≈1e-2 relative accuracy vs an all-f32 reference).
    """
    N, Cin, H, W = x.shape
    Cout, Cin2, KH, KW = weight.shape
    assert Cin == Cin2, "channel mismatch"
    OH, OW = H - KH + 1, W - KW + 1
    KK = KH * KW
    # TODO(synk): stride/padding/dilation/groups != F.conv2d defaults are not implemented.

    # ---- parameter squashing (one-shot tiny kernel, hoisted out of the grid) ----
    # Fused-contraction layout: wsq[co, kk*Cin + ci] = tanh(w[co, ci, kh, kw]),
    # with kk = kh*KW + kw (matches the slab row order built inside the kernel).
    w2 = weight.transpose(0, 2, 3, 1).reshape(Cout, KK * Cin).astype(jnp.float32)
    if bias is None:
        b2 = jnp.zeros((Cout, 1), dtype=jnp.float32)          # tanh(0)=0 -> no-op bias
    else:
        b2 = bias.reshape(Cout, 1).astype(jnp.float32)

    wsq, bsq = pl.pallas_call(
        _squash_kernel,
        out_shape=(jax.ShapeDtypeStruct((Cout, KK * Cin), jnp.bfloat16),
                   jax.ShapeDtypeStruct((Cout, 1), jnp.float32)),
    )(w2, b2)

    # ---- flat-spatial bf16 layout: conv becomes shifted lane-axis slices ----
    S = H * W
    d_max = (KH - 1) * W + (KW - 1)                  # largest shift offset
    LT = min(_round_up(OH * W, 128), _round_up(lane_tile, 128))  # lane tile (mult of 128)
    Lc = _round_up(OH * W, LT)                       # padded compute length
    T = Lc // LT                                     # spatial-tile grid extent
    S_pad = _round_up(max(S, Lc + d_max), 128)       # every shifted slice in-bounds
    x_flat = x.astype(jnp.bfloat16).reshape(N, Cin, S)   # bf16: half DMA + half VMEM
    if S_pad > S:
        x_flat = jnp.pad(x_flat, ((0, 0), (0, 0), (0, S_pad - S)))

    def _conv_kernel(x_ref, w_ref, b_ref, o_ref, slab_ref):
        # x_ref: (Cin, S_pad) bf16 (resident across the inner spatial-tile axis)
        # w_ref: (Cout, KK*Cin) bf16 | b_ref: (Cout, 1) f32
        # o_ref: (Cout, LT) bf16     | slab_ref: (KK*Cin, LT) bf16 VMEM scratch
        base = pl.multiple_of(pl.program_id(1) * LT, 128)
        # Build the stacked, lane-dense operand once per tile (KK small copies),
        # then do a single deep-contraction matmul on the MXU.
        for kh in range(KH):                          # static unroll
            for kw in range(KW):
                kk = kh * KW + kw
                slab_ref[pl.ds(kk * Cin, Cin), :] = \
                    x_ref[:, pl.ds(base + kh * W + kw, LT)]
        acc = jnp.dot(w_ref[...], slab_ref[...], preferred_element_type=jnp.float32)
        o_ref[...] = (acc + b_ref[...]).astype(o_ref.dtype)

    # ---- VMEM budget (generation-aware) ----
    bf = 2  # bf16 bytes
    need = (2 * Cin * S_pad * bf          # x image slab, double-buffered
            + 2 * Cout * LT * bf          # out tile, double-buffered
            + Cout * KK * Cin * bf        # resident weights
            + Cout * 4                    # resident bias
            + KK * Cin * LT * bf)         # slab scratch
    try:
        info = pltpu.get_tpu_info()
        vmem_cap = int(getattr(info, "vmem_capacity_bytes", 64 * 1024 * 1024))
    except Exception:
        vmem_cap = 64 * 1024 * 1024       # conservative (v7x per-TC) fallback
    cap = (vmem_cap * 3) // 4             # leave headroom for compiler scratch
    vmem_limit = int(max(4 * 1024 * 1024, min(cap, 2 * need)))
    # TODO(synk): if `need` itself exceeds `cap` (huge Cin*H*W images), tile the
    # input spatial axis with a d_max halo instead of keeping the image resident.

    cost = pl.CostEstimate(
        flops=2 * N * Cout * KK * Cin * Lc,
        transcendentals=0,
        bytes_accessed=(N * Cin * S_pad * bf          # x read once per image
                        + Cout * KK * Cin * bf + Cout * 4
                        + N * Cout * Lc * bf))        # bf16 output writeback

    out_flat = pl.pallas_call(
        _conv_kernel,
        out_shape=jax.ShapeDtypeStruct((N, Cout, Lc), jnp.bfloat16),
        grid=(N, T),
        in_specs=[
            pl.BlockSpec((None, Cin, S_pad), lambda n, t: (n, 0, 0)),  # image slab (resident over t)
            pl.BlockSpec((Cout, KK * Cin), lambda n, t: (0, 0)),       # resident weights
            pl.BlockSpec((Cout, 1), lambda n, t: (0, 0)),              # resident bias
        ],
        out_specs=pl.BlockSpec((None, Cout, LT), lambda n, t: (n, 0, t)),
        scratch_shapes=[pltpu.VMEM((KK * Cin, LT), jnp.bfloat16)],
        compiler_params=pltpu.CompilerParams(
            dimension_semantics=("parallel", "arbitrary"),
            vmem_limit_bytes=vmem_limit),
        cost_estimate=cost,
    )(x_flat, wsq, bsq)

    # Valid outputs are flat positions p = oh*W + ow with ow < OW; the crop is a
    # single fused slice+cast pass restoring the exact NCHW F.conv2d result.
    # (Consumers able to work on the padded channel-major layout can skip it.)
    out = out_flat[:, :, :OH * W].reshape(N, Cout, OH, W)[:, :, :, :OW]
    return out.astype(x.dtype)


def _reference_conv(x, weight, bias):
    # Pure-JAX reference of the PyTorch forward.
    w = jnp.tanh(weight)
    y = jax.lax.conv_general_dilated(
        x, w, window_strides=(1, 1), padding="VALID",
        dimension_numbers=("NCHW", "OIHW", "NCHW"))
    if bias is not None:
        y = y + jnp.tanh(bias)[None, :, None, None]
    return y


if __name__ == "__main__":
    # Small LeNet-5-style conv shapes.
    N, Cin, H, W = 2, 4, 16, 16
    Cout, KH, KW = 8, 3, 3

    key = jax.random.PRNGKey(0)
    kx, kw, kb = jax.random.split(key, 3)

    fan_in = Cin * KH * KW
    bound = 1.0 / (fan_in ** 0.5)
    x = jax.random.normal(kx, (N, Cin, H, W), dtype=jnp.float32)
    weight = jax.random.uniform(kw, (Cout, Cin, KH, KW),
                                minval=-bound, maxval=bound, dtype=jnp.float32)
    bias = jax.random.uniform(kb, (Cout,), minval=-bound, maxval=bound,
                              dtype=jnp.float32)

    out = jax.block_until_ready(ternary_conv2d(x, weight, bias))
    ref = jax.block_until_ready(_reference_conv(x, weight, bias))

    assert out.shape == (N, Cout, H - KH + 1, W - KW + 1), out.shape
    assert out.dtype == x.dtype, out.dtype
    # bf16 MXU operands (x and tanh(W)) -> looser tolerance than the f32 reference.
    assert jnp.allclose(out, ref, atol=5e-2, rtol=5e-2), "mismatch vs reference"

    print("KERNEL_OK")
</pallas_src>

<mosaic_0001>
module attributes {stable_mosaic.version = 11 : i64} {
  func.func @_squash_kernel(%arg0: memref<8x36xf32, #tpu.memory_space<vmem>>, %arg1: memref<8x1xf32, #tpu.memory_space<vmem>>, %arg2: memref<8x36xbf16, #tpu.memory_space<vmem>>, %arg3: memref<8x1xf32, #tpu.memory_space<vmem>>) attributes {dimension_semantics = [], scalar_prefetch = 0 : i64, scratch_operands = 0 : i64, tpu.core_type = #tpu.core_type<tc>} {
    %c0 = arith.constant 0 : index
    %c0_0 = arith.constant 0 : index
    %0 = vector.load %arg0[%c0, %c0_0] : memref<8x36xf32, #tpu.memory_space<vmem>>, vector<8x36xf32>
    %1 = math.tanh %0 : vector<8x36xf32>
    %2 = arith.truncf %1 : vector<8x36xf32> to vector<8x36xbf16>
    %c0_1 = arith.constant 0 : index
    %c0_2 = arith.constant 0 : index
    %3 = vector.load %arg2[%c0_1, %c0_2] : memref<8x36xbf16, #tpu.memory_space<vmem>>, vector<8x36xbf16>
    tpu.vector_store %arg2[%c0_1, %c0_2], %2 {strides = array<i32>} : memref<8x36xbf16, #tpu.memory_space<vmem>>, vector<8x36xbf16>,
    %c0_3 = arith.constant 0 : index
    %c0_4 = arith.constant 0 : index
    %4 = vector.load %arg1[%c0_3, %c0_4] : memref<8x1xf32, #tpu.memory_space<vmem>>, vector<8x1xf32>
    %5 = math.tanh %4 : vector<8x1xf32>
    %c0_5 = arith.constant 0 : index
    %c0_6 = arith.constant 0 : index
    %6 = vector.load %arg3[%c0_5, %c0_6] : memref<8x1xf32, #tpu.memory_space<vmem>>, vector<8x1xf32>
    tpu.vector_store %arg3[%c0_5, %c0_6], %5 {strides = array<i32>} : memref<8x1xf32, #tpu.memory_space<vmem>>, vector<8x1xf32>,
    return
  }
}

</mosaic_0001>

<bundles_post_ra>
// kernel: tpu_custom_call.1
= control target key start
LH: loop header
LB: loop body
LE: loop exit
PB: predicated region body
PF: predicated region fallthrough
CT: control target
= control target key end

     0   :  { %s112_s0 = inlined_call_operand.vmem [shape: f32[8,36], index: 0, kind: input, shape index: {}]   ;;  %s113_s1 = inlined_call_operand.vmem [shape: f32[8,1], index: 1, kind: input, shape index: {}]   ;;  %s114_s2 = inlined_call_operand.hbm [shape: bf16[8,36], index: 2, kind: output, shape index: {0}]   ;;  %s115_s3 = inlined_call_operand.vmem [shape: f32[8,1], index: 3, kind: output, shape index: {1}]  }
   0x1   :  { %v14_v0 = vld [vmem:[%s112_s0] sm:$0xff] }
   0x2   :  { %v19_v1 = vld [vmem:[%s113_s1] sm:$0xff] }
   0x3   :  { %9 = vsyncpa [#allocation3], 0  ;;  %42 = vtanh.f32 %v14_v0  ;;  %s70_s16 = smov [#allocation2]   ;;  %vm21_vm0 = vcmask 7168   ;;  %vm17_vm1 = vcmask 289792  }
   0x4   :  { %44 = vtanh.f32 %v19_v1  ;;  %s29_s17 = sshll.u32 %s70_s16, 4  ;;  %s30_s17 = int_to_ptr.vmem [resolvable:$true] %s29_s17 }
   0x5   :  { %s46_s0 = scalar_lea.vmem %s30_s17, 64  ;;  %p51_p1 = scmp.lt.s32.totalorder %s30_s17, %s30_s17 }
   0x6   :  { %p47_p0 = scmp.ne.s32.totalorder %s30_s17, %s46_s0  ;;  %p52_p2 = scmp.lt.s32.totalorder %s46_s0, %s46_s0 }
   0x8   :  { %p53_p3 = por %p52_p2, %p51_p1 }
   0xa   :  { %p54_p4 = pnand %p53_p3, %p47_p0 }
   0xd   :  { %v43_v2 = vpop.eup %42 }
   0xe   :  { %v45_v3 = vpop.eup %44  ;;  %v16_v4 = vpack.c.bf16 %v43_v2, %v43_v2 }
   0xf   :  { %22 = vst.msk [vmem:[%s115_s3] sm:$0xff] %vm21_vm0, %v45_v3 }
  0x10   :  { %18 = vst.msk [vmem:[#allocation2] sm:$0xf] %vm17_vm1, %v16_v4 }
  0x11   :  { %57 = shalt.err (!%p54_p4)
}
  0x12   :  { %s58_s21 = scalar_lea.hbm %s114_s2, 64 }
  0x13   :  { %p59_p5 = scmp.ne.s32.totalorder %s114_s2, %s58_s21  ;;  %p62_p6 = scmp.lt.u32.totalorder %s58_s21, %s114_s2 }
  0x15   :  { %p64_p7 = pnand %p62_p6, %p59_p5 }
  0x17   :  { %67 = shalt.err (!%p64_p7)
}
  0x18   :  { %32 = dma.vmem_to_hbm [thread:$0]  %s30_s17, 64, %s114_s2, [#allocation3]  }
  0x19   :  { %68 = dma.done.wait [#allocation3], 64  }
  0x1a   :  { %69 = vsyncadd [#allocation3], 4294967232 }
  0x1b   :  { %40 = vsyncpa [#allocation3], 1 }

</bundles_post_ra>
